<compile_context>
chip_gen: v7x
topology: tpu7x:2x2x1
jax: 0.10.0
libtpu: 0.0.40
codegen_flags: <defaults>
</compile_context>

<pallas_src>
import jax
import jax.numpy as jnp
from jax.experimental import pallas as pl
from jax.experimental.pallas import tpu as pltpu


def _round_up(v, m):
    return ((v + m - 1) // m) * m


def _cdiv(a, b):
    return (a + b - 1) // b


# ---------------------------------------------------------------------------
# Kernels
# ---------------------------------------------------------------------------
def _kan_kernel_f32out(x_ref, a_ref, w_ref, b_ref, o_ref):
    """f32 output: accumulate directly into the resident output block."""
    k = pl.program_id(2)

    @pl.when(k == 0)
    def _():
        o_ref[...] = jnp.zeros_like(o_ref)

    x = x_ref[...]                                   # (tm, tk) f32
    a0 = a_ref[0:1, :]                               # (1, tk)  softmax coeff of x
    a1 = a_ref[1:2, :]                               # (1, tk)  softmax coeff of x^2
    # a0*x + a1*x^2 == x*(a0 + x*a1): 2 vmul + 1 vadd per element (VPU only).
    v = x * (a0 + x * a1)

    # bf16 MXU with f32 accumulation.
    o_ref[...] += jnp.dot(v.astype(jnp.bfloat16), w_ref[...],
                          preferred_element_type=jnp.float32)

    @pl.when(k == pl.num_programs(2) - 1)
    def _():
        o_ref[...] += b_ref[...]


def _kan_kernel_acc(x_ref, a_ref, w_ref, b_ref, o_ref, acc_ref):
    """Low-precision output: f32 accumulator scratch, cast in the epilogue."""
    k = pl.program_id(2)

    @pl.when(k == 0)
    def _():
        acc_ref[...] = jnp.zeros_like(acc_ref)

    x = x_ref[...].astype(jnp.float32)
    a0 = a_ref[0:1, :]
    a1 = a_ref[1:2, :]
    v = x * (a0 + x * a1)

    acc_ref[...] += jnp.dot(v.astype(jnp.bfloat16), w_ref[...],
                            preferred_element_type=jnp.float32)

    @pl.when(k == pl.num_programs(2) - 1)
    def _():
        o_ref[...] = (acc_ref[...] + b_ref[...]).astype(o_ref.dtype)


# ---------------------------------------------------------------------------
# One-time parameter transform (hoisted out of the per-call forward path)
# ---------------------------------------------------------------------------
def prepare_dense_kan_params(act_logits, weight, bias, *, tn=512, tk=1024):
    """Precompute softmax coefficients, W^T in bf16, bias row — padded once.

    act_logits: (D, K=3); weight: (O, D); bias: (O,).
    """
    O, D = weight.shape
    K = act_logits.shape[1]
    if K != 3:
        raise NotImplementedError(
            "kernel hardcodes the default [x, x**2, zeros] activation set")

    tn = min(tn, _round_up(O, 128))
    tk = min(tk, _round_up(D, 128))
    Dp = _round_up(D, tk)
    Op = _round_up(O, tn)

    # Softmax over the activation axis in f32, once (D*3 exps total).  Only
    # the identity / square coefficients survive the weighted sum; the zeros
    # activation only enters the softmax denominator, already included here.
    a = jax.nn.softmax(act_logits.astype(jnp.float32), axis=1)       # (D, K)
    a01 = a[:, :2].T                                                  # (2, D)
    w_t = weight.astype(jnp.bfloat16).T                               # (D, O)
    b2 = bias.astype(jnp.float32).reshape(1, O)                       # (1, O)

    if Dp != D or Op != O:
        # Zero padding: padded columns have a0 = a1 = 0 and zero W rows, so
        # they contribute exactly 0 to the output.
        a01 = jnp.zeros((2, Dp), jnp.float32).at[:, :D].set(a01)
        w_t = jnp.zeros((Dp, Op), jnp.bfloat16).at[:D, :O].set(w_t)
        b2 = jnp.zeros((1, Op), jnp.float32).at[:, :O].set(b2)

    return dict(a01=a01, w_t=w_t, b2=b2, tn=tn, tk=tk, D=D, O=O)


# ---------------------------------------------------------------------------
# Forward
# ---------------------------------------------------------------------------
def dense_kan_forward(x, act_logits=None, weight=None, bias=None, *,
                      params=None, tm=None, row_block=512, w_buffers=2):
    """x: (B, D) -> (B, O).

    Pass a prepared `params` dict (from prepare_dense_kan_params) to avoid
    re-doing the softmax / transpose / bf16-cast / padding on every call.
    """
    if params is None:
        params = prepare_dense_kan_params(act_logits, weight, bias)

    a01, w_t, b2 = params["a01"], params["w_t"], params["b2"]
    tn, tk = params["tn"], params["tk"]
    D, O = params["D"], params["O"]

    B, Dx = x.shape
    assert Dx == D, "input feature dim mismatch"
    Dp, Op = w_t.shape

    # Adaptive row tile: bounds batch-padding waste to <8 rows per tile
    # (e.g. B=300 -> tm=152, not a 512-row pad).
    if tm is None:
        n_row_tiles = _cdiv(B, row_block)
        tm = min(row_block, _round_up(_cdiv(B, n_row_tiles), 8))
    Bp = _round_up(B, tm)

    # v7x megacore: if the parallel grid collapsed to a single tile, halve tm
    # (when the batch allows) so both TensorCores get work.
    if (Bp // tm) * (Op // tn) == 1 and tm > 8:
        tm_half = _round_up(_cdiv(tm, 2), 8)
        if B > tm_half:
            tm = tm_half
            Bp = _round_up(B, tm)

    out_dtype = x.dtype
    out_bytes = jnp.dtype(out_dtype).itemsize
    use_acc = out_dtype != jnp.float32

    def _footprint(tk_):
        # double-buffered inputs + double-buffered output + optional scratch
        return (2 * (tm * tk_ * 4 + tk_ * tn * 2 + 2 * tk_ * 4 + tn * 4)
                + 2 * tm * tn * out_bytes
                + (tm * tn * 4 if use_acc else 0))

    # v7x has only 64 MiB VMEM per TensorCore; keep the working set well
    # under that (also trivially fits v5e/v6e's 128 MiB).
    while _footprint(tk) > (40 << 20) and tk % 256 == 0 and tk > 128:
        tk //= 2
    vmem_limit = min(max(_footprint(tk) + (4 << 20), 16 << 20), 96 << 20)

    # Pad x only when needed (skip the HBM copy for aligned shapes).
    if Bp != B or Dp != D:
        x_p = jnp.zeros((Bp, Dp), x.dtype).at[:B, :D].set(x)
    else:
        x_p = x

    grid = (Bp // tm, Op // tn, Dp // tk)

    w_spec = pl.BlockSpec((tk, tn), lambda i, j, k: (k, j))
    if w_buffers > 2:
        # v5e escape hatch if the (now fast) bf16 matmul becomes DMA-bound.
        w_spec = pl.BlockSpec((tk, tn), lambda i, j, k: (k, j),
                              pipeline_mode=pl.Buffered(w_buffers))

    in_specs = [
        pl.BlockSpec((tm, tk), lambda i, j, k: (i, k)),    # x tile
        pl.BlockSpec((2, tk), lambda i, j, k: (0, k)),     # softmax coeff tile
        w_spec,                                            # W^T tile (bf16)
        pl.BlockSpec((1, tn), lambda i, j, k: (0, j)),     # bias tile
    ]
    out_spec = pl.BlockSpec((tm, tn), lambda i, j, k: (i, j))

    kernel = _kan_kernel_acc if use_acc else _kan_kernel_f32out
    scratch = [pltpu.VMEM((tm, tn), jnp.float32)] if use_acc else []

    cost = pl.CostEstimate(
        flops=2 * Bp * Dp * Op + 3 * Bp * Dp,
        transcendentals=0,
        bytes_accessed=(4 * Bp * Dp + 2 * Dp * Op + out_bytes * Bp * Op
                        + 4 * 2 * Dp + 4 * Op),
    )

    out_p = pl.pallas_call(
        kernel,
        out_shape=jax.ShapeDtypeStruct((Bp, Op), out_dtype),
        grid_spec=pltpu.PrefetchScalarGridSpec(
            num_scalar_prefetch=0,
            grid=grid,
            in_specs=in_specs,
            out_specs=out_spec,
            scratch_shapes=scratch,
        ),
        compiler_params=pltpu.CompilerParams(
            dimension_semantics=("parallel", "parallel", "arbitrary"),
            vmem_limit_bytes=int(vmem_limit),
        ),
        cost_estimate=cost,
    )(x_p, a01, w_t, b2)

    if Bp != B or Op != O:
        out_p = out_p[:B, :O]
    return out_p


# ---------------------------------------------------------------------------
# Pure-JAX reference (PyTorch semantics, f32)
# ---------------------------------------------------------------------------
def dense_kan_reference(x, act_logits, weight, bias):
    a = jax.nn.softmax(act_logits, axis=1)                      # (D, K)
    y = jnp.stack([x, x ** 2, jnp.zeros_like(x)], axis=2)       # (B, D, K)
    v = (y * a[None]).sum(axis=2)                               # (B, D)
    return v @ weight.T + bias


if __name__ == "__main__":
    key = jax.random.PRNGKey(0)
    kx, kw, kb, kl = jax.random.split(key, 4)

    batch, input_dim, output_dim, num_act = 8, 32, 16, 3

    x = jax.random.normal(kx, (batch, input_dim), dtype=jnp.float32)

    # act_logits: nn.Parameter(zeros) in __init__; use small random values so
    # the softmax mixture is non-trivial for the check.
    act_logits = 0.5 * jax.random.normal(kl, (input_dim, num_act), dtype=jnp.float32)
    # nn.Linear(input_dim, output_dim): weight (O, D), bias (O,).
    bound = 1.0 / (input_dim ** 0.5)
    weight = jax.random.uniform(kw, (output_dim, input_dim),
                                minval=-bound, maxval=bound, dtype=jnp.float32)
    bias = jax.random.uniform(kb, (output_dim,),
                              minval=-bound, maxval=bound, dtype=jnp.float32)

    # One-time param transform (softmax, W^T bf16, padding) — hoisted out of
    # the per-call forward path as recommended by the performance review.
    params = prepare_dense_kan_params(act_logits, weight, bias)

    out = dense_kan_forward(x, params=params)
    out = jax.block_until_ready(out)

    ref = dense_kan_reference(x, act_logits, weight, bias)
    assert out.shape == (batch, output_dim)
    # bf16 MXU operands with f32 accumulation: tolerance loosened accordingly.
    assert jnp.allclose(out, ref, atol=2e-2, rtol=2e-2), "mismatch vs reference"

    print("KERNEL_OK")
</pallas_src>

<mosaic_0001>
module attributes {stable_mosaic.version = 11 : i64} {
  func.func @_kan_kernel_f32out(%arg0: i32, %arg1: i32, %arg2: i32, %arg3: memref<8x128xf32, #tpu.memory_space<vmem>>, %arg4: memref<2x128xf32, #tpu.memory_space<vmem>>, %arg5: memref<128x128xbf16, #tpu.memory_space<vmem>>, %arg6: memref<1x128xf32, #tpu.memory_space<vmem>>, %arg7: memref<8x128xf32, #tpu.memory_space<vmem>>) attributes {dimension_semantics = [#tpu.dimension_semantics<parallel>, #tpu.dimension_semantics<parallel>, #tpu.dimension_semantics<arbitrary>], iteration_bounds = array<i64: 1, 1, 1>, scalar_prefetch = 0 : i64, scratch_operands = 0 : i64, tpu.core_type = #tpu.core_type<tc>, window_params = [{transform_indices = @transform_0, window_bounds = array<i64: 8, 128>}, {transform_indices = @transform_1, window_bounds = array<i64: 2, 128>}, {transform_indices = @transform_2, window_bounds = array<i64: 128, 128>}, {transform_indices = @transform_3, window_bounds = array<i64: 1, 128>}, {transform_indices = @transform_4, window_bounds = array<i64: 8, 128>}]} {
    %c0_i32 = arith.constant 0 : i32
    %0 = arith.cmpi eq, %arg2, %c0_i32 : i32
    %1 = arith.extui %0 : i1 to i32
    %c0_i32_0 = arith.constant 0 : i32
    %2 = arith.cmpi ne, %1, %c0_i32_0 : i32
    scf.if %2 {
      %cst_13 = arith.constant 0.000000e+00 : f32
      %20 = vector.broadcast %cst_13 : f32 to vector<8x128xf32>
      %c0_14 = arith.constant 0 : index
      %c0_15 = arith.constant 0 : index
      %21 = vector.load %arg7[%c0_14, %c0_15] : memref<8x128xf32, #tpu.memory_space<vmem>>, vector<8x128xf32>
      tpu.vector_store %arg7[%c0_14, %c0_15], %20 {strides = array<i32>} : memref<8x128xf32, #tpu.memory_space<vmem>>, vector<8x128xf32>,
    } else {
    }
    %c0 = arith.constant 0 : index
    %c0_1 = arith.constant 0 : index
    %3 = vector.load %arg3[%c0, %c0_1] : memref<8x128xf32, #tpu.memory_space<vmem>>, vector<8x128xf32>
    %c0_2 = arith.constant 0 : index
    %c0_3 = arith.constant 0 : index
    %4 = vector.load %arg4[%c0_2, %c0_3] : memref<2x128xf32, #tpu.memory_space<vmem>>, vector<1x128xf32>
    %c1 = arith.constant 1 : index
    %c0_4 = arith.constant 0 : index
    %5 = vector.load %arg4[%c1, %c0_4] : memref<2x128xf32, #tpu.memory_space<vmem>>, vector<1x128xf32>
    %6 = vector.broadcast %5 : vector<1x128xf32> to vector<8x128xf32>
    %7 = arith.mulf %3, %6 : vector<8x128xf32>
    %8 = vector.broadcast %4 : vector<1x128xf32> to vector<8x128xf32>
    %9 = arith.addf %8, %7 : vector<8x128xf32>
    %10 = arith.mulf %3, %9 : vector<8x128xf32>
    %c0_5 = arith.constant 0 : index
    %c0_6 = arith.constant 0 : index
    %11 = vector.load %arg7[%c0_5, %c0_6] : memref<8x128xf32, #tpu.memory_space<vmem>>, vector<8x128xf32>
    %12 = arith.truncf %10 : vector<8x128xf32> to vector<8x128xbf16>
    %c0_7 = arith.constant 0 : index
    %c0_8 = arith.constant 0 : index
    %13 = vector.load %arg5[%c0_7, %c0_8] : memref<128x128xbf16, #tpu.memory_space<vmem>>, vector<128x128xbf16>
    %cst = arith.constant dense<0.000000e+00> : vector<8x128xf32>
    %14 = tpu.matmul %12, %13, %cst {dimension_numbers = #tpu.dot_dimension_numbers<[1], [0], [0], [1], [0, 0, 1, 1], [], []>} : vector<8x128xbf16>, vector<128x128xbf16>, vector<8x128xf32> -> vector<8x128xf32>
    %15 = arith.addf %11, %14 : vector<8x128xf32>
    %c0_9 = arith.constant 0 : index
    %c0_10 = arith.constant 0 : index
    %16 = vector.load %arg7[%c0_9, %c0_10] : memref<8x128xf32, #tpu.memory_space<vmem>>, vector<8x128xf32>
    tpu.vector_store %arg7[%c0_9, %c0_10], %15 {strides = array<i32>} : memref<8x128xf32, #tpu.memory_space<vmem>>, vector<8x128xf32>,
    %c0_i32_11 = arith.constant 0 : i32
    %17 = arith.cmpi eq, %arg2, %c0_i32_11 : i32
    %18 = arith.extui %17 : i1 to i32
    %c0_i32_12 = arith.constant 0 : i32
    %19 = arith.cmpi ne, %18, %c0_i32_12 : i32
    scf.if %19 {
      %c0_13 = arith.constant 0 : index
      %c0_14 = arith.constant 0 : index
      %20 = vector.load %arg7[%c0_13, %c0_14] : memref<8x128xf32, #tpu.memory_space<vmem>>, vector<8x128xf32>
      %c0_15 = arith.constant 0 : index
      %c0_16 = arith.constant 0 : index
      %21 = vector.load %arg6[%c0_15, %c0_16] : memref<1x128xf32, #tpu.memory_space<vmem>>, vector<1x128xf32>
      %22 = vector.broadcast %21 : vector<1x128xf32> to vector<8x128xf32>
      %23 = arith.addf %20, %22 : vector<8x128xf32>
      %c0_17 = arith.constant 0 : index
      %c0_18 = arith.constant 0 : index
      %24 = vector.load %arg7[%c0_17, %c0_18] : memref<8x128xf32, #tpu.memory_space<vmem>>, vector<8x128xf32>
      tpu.vector_store %arg7[%c0_17, %c0_18], %23 {strides = array<i32>} : memref<8x128xf32, #tpu.memory_space<vmem>>, vector<8x128xf32>,
    } else {
    }
    return
  }
  func.func @transform_0(%arg0: i32, %arg1: i32, %arg2: i32) -> (i32, i32) {
    %c0_i32 = arith.constant 0 : i32
    return %arg0, %arg2 : i32, i32
  }
  func.func @transform_1(%arg0: i32, %arg1: i32, %arg2: i32) -> (i32, i32) {
    %c0_i32 = arith.constant 0 : i32
    %c0_i32_0 = arith.constant 0 : i32
    return %c0_i32, %arg2 : i32, i32
  }
  func.func @transform_2(%arg0: i32, %arg1: i32, %arg2: i32) -> (i32, i32) {
    %c0_i32 = arith.constant 0 : i32
    return %arg2, %arg1 : i32, i32
  }
  func.func @transform_3(%arg0: i32, %arg1: i32, %arg2: i32) -> (i32, i32) {
    %c0_i32 = arith.constant 0 : i32
    %c0_i32_0 = arith.constant 0 : i32
    return %c0_i32, %arg1 : i32, i32
  }
  func.func @transform_4(%arg0: i32, %arg1: i32, %arg2: i32) -> (i32, i32) {
    %c0_i32 = arith.constant 0 : i32
    return %arg0, %arg1 : i32, i32
  }
}

</mosaic_0001>

<bundles_post_ra>
// kernel: tpu_custom_call.1
= control target key start
LH: loop header
LB: loop body
LE: loop exit
PB: predicated region body
PF: predicated region fallthrough
CT: control target
= control target key end

     0   :  { %9 = vsyncpa [#allocation3], 0  ;;  %s412_s0 = inlined_call_operand.hbm [shape: f32[8,128], index: 0, kind: input, shape index: {}]   ;;  %s413_s1 = inlined_call_operand.vmem [shape: f32[2,128], index: 1, kind: input, shape index: {}]   ;;  %s414_s2 = inlined_call_operand.hbm [shape: bf16[128,128], index: 2, kind: input, shape index: {}]   ;;  %s415_s3 = inlined_call_operand.vmem [shape: f32[1,128], index: 3, kind: input, shape index: {}]   ;;  %s416_s4 = inlined_call_operand.hbm [shape: f32[8,128], index: 4, kind: output, shape index: {}]  }
   0x1   :  { %10 = vsyncpa [#allocation6], 0 }
   0x2   :  { %11 = vsyncpa [#allocation4], 0  ;;  %s328_s15 = smov [#allocation2]   ;;  %s329_s17 = smov [#allocation5]  }
   0x3   :  { %s18_s16 = sshll.u32 %s328_s15, 4  ;;  %s29_s18 = sshll.u32 %s329_s17, 4  ;;  %s19_s16 = int_to_ptr.vmem [resolvable:$true] %s18_s16  ;;  %s360_s18 = int_to_ptr.vmem [resolvable:$true] %s29_s18 }
   0x4   :  { %s256_s21 = scalar_lea.hbm %s412_s0, 128 }
   0x5   :  { %p257_p0 = scmp.ne.s32.totalorder %s412_s0, %s256_s21  ;;  %p260_p1 = scmp.lt.u32.totalorder %s256_s21, %s412_s0 }
   0x7   :  { %p262_p2 = pnand %p260_p1, %p257_p0 }
   0x9   :  { %265 = shalt.err (!%p262_p2)
}
   0xa   :  { %s266_s26 = scalar_lea.vmem %s19_s16, 128  ;;  %p271_p4 = scmp.lt.s32.totalorder %s19_s16, %s19_s16 }
   0xb   :  { %p267_p3 = scmp.ne.s32.totalorder %s19_s16, %s266_s26  ;;  %p272_p5 = scmp.lt.s32.totalorder %s266_s26, %s266_s26 }
   0xd   :  { %p273_p6 = por %p272_p5, %p271_p4 }
   0xf   :  { %p274_p7 = pnand %p273_p6, %p267_p3 }
  0x11   :  { %277 = shalt.err (!%p274_p7)
}
  0x12   :  { %21 = dma.hbm_to_vmem [thread:$0]  %s412_s0, 128, %s19_s16, [#allocation3]  }
  0x13   :  { %s278_s5 = scalar_lea.hbm %s414_s2, 1024 }
  0x14   :  { %p279_p8 = scmp.ne.s32.totalorder %s414_s2, %s278_s5  ;;  %p282_p9 = scmp.lt.u32.totalorder %s278_s5, %s414_s2 }
  0x16   :  { %p284_p10 = pnand %p282_p9, %p279_p8 }
  0x18   :  { %287 = shalt.err (!%p284_p10)
}
  0x19   :  { %s288_s10 = scalar_lea.vmem %s360_s18, 1024  ;;  %p293_p12 = scmp.lt.s32.totalorder %s360_s18, %s360_s18 }
  0x1a   :  { %p289_p11 = scmp.ne.s32.totalorder %s360_s18, %s288_s10  ;;  %p294_p13 = scmp.lt.s32.totalorder %s288_s10, %s288_s10 }
  0x1c   :  { %p295_p0 = por %p294_p13, %p293_p12 }
  0x1e   :  { %p296_p1 = pnand %p295_p0, %p289_p11 }
  0x20   :  { %299 = shalt.err (!%p296_p1)
}
  0x21   :  { %s330_s0 = smov 64   ;;  %s331_s11 = smov 4  }
  0x22   :  { %35 = dma.hbm_to_vmem [thread:$0]  %s414_s2, 1024, %s360_s18, [#allocation6], %s330_s0, %s330_s0, %s331_s11  }
  0x23   :  { %322 = dma.done.wait [#allocation3], 128  }
  0x24   :  { %323 = vsyncadd [#allocation3], 4294967168 }
  0x25   :  { %324 = dma.done.wait [#allocation6], 1024  }
  0x26   :  { %325 = vsyncadd [#allocation6], 4294966272  ;;  %v332_v0 = vmov 0.0   ;;  %vm333_vm0 = vmmov 0   ;;  %v248_v1 = vld [vmem:[#allocation5] sm:$0xff]   ;;  %v249_v2 = vld [vmem:[#allocation5 + $0x8] sm:$0xff]  }
  0x27   :  { %221 = vmatprep.subr.bf16.mxu0 %v332_v0  ;;  %237 = vmatprep.mubr.msk.bf16.mxu0 %vm333_vm0, %v332_v0  ;;  %v250_v3 = vld [vmem:[#allocation5 + $0x10] sm:$0xff]   ;;  %v251_v4 = vld [vmem:[#allocation5 + $0x18] sm:$0xff]   ;;  %v252_v5 = vld [vmem:[#allocation5 + $0x20] sm:$0xff]   ;;  %s334_s19 = smov [#allocation7]  }
  0x28   :  { %222 = vmatpush3.bf16.msra.mxu0 %v248_v1  ;;  %v50_v6 = vld [vmem:[#allocation2] sm:$0xff]  ;;  %v253_v9 = vld [vmem:[#allocation5 + $0x28] sm:$0xff]   ;;  %v254_v12 = vld [vmem:[#allocation5 + $0x30] sm:$0xff]   ;;  %s191_s20 = sshll.u32 %s334_s19, 4  ;;  %s192_s20 = int_to_ptr.vmem [resolvable:$true] %s191_s20 }
  0x29   :  { %223 = vmatprep.subr.bf16.mxu0 %v332_v0  ;;  %v201_v7 = vld [vmem:[%s413_s1 + $0x1] ss:$0 sm:$0xff]  ;;  %v202_v10 = vld [vmem:[%s413_s1] ss:$0 sm:$0xff]  ;;  %s300_s1 = scalar_lea.vmem %s192_s20, 128  ;;  %p305_p3 = scmp.lt.s32.totalorder %s192_s20, %s192_s20 }
  0x2a   :  { %v57_v8 = vmul.f32 %v201_v7, %v50_v6  ;;  %v255_v14 = vld [vmem:[#allocation5 + $0x38] sm:$0xff]   ;;  %p301_p2 = scmp.ne.s32.totalorder %s192_s20, %s300_s1  ;;  %p306_p4 = scmp.lt.s32.totalorder %s300_s1, %s300_s1 }
  0x2b   :  { %v211_v17 = vld [vmem:[%s415_s3] ss:$0 sm:$0xff] }
  0x2c   :  { %224 = vmatpush3.bf16.msra.mxu0 %v249_v2  ;;  %v62_v11 = vadd.f32 %v202_v10, %v57_v8  ;;  %p307_p5 = por %p306_p4, %p305_p3 }
  0x2d   :  { %225 = vmatprep.subr.bf16.mxu0 %v332_v0 }
  0x2e   :  { %v63_v13 = vmul.f32 %v62_v11, %v50_v6  ;;  %p308_p6 = pnand %p307_p5, %p301_p2 }
  0x30   :  { %226 = vmatpush3.bf16.msra.mxu0 %v250_v3  ;;  %v65_v15 = vpack.c.bf16 %v63_v13, %v63_v13 }
  0x31   :  { %227 = vmatprep.subr.bf16.mxu0 %v332_v0 }
  0x34   :  { %228 = vmatpush3.bf16.msra.mxu0 %v251_v4 }
  0x35   :  { %229 = vmatprep.subr.bf16.mxu0 %v332_v0 }
  0x38   :  { %230 = vmatpush3.bf16.msra.mxu0 %v252_v5 }
  0x39   :  { %231 = vmatprep.subr.bf16.mxu0 %v332_v0 }
  0x3c   :  { %232 = vmatpush3.bf16.msra.mxu0 %v253_v9 }
  0x3d   :  { %233 = vmatprep.subr.bf16.mxu0 %v332_v0 }
  0x40   :  { %234 = vmatpush3.bf16.msra.mxu0 %v254_v12 }
  0x41   :  { %235 = vmatprep.subr.bf16.mxu0 %v332_v0 }
  0x44   :  { %236 = vmatpush3.bf16.msra.mxu0 %v255_v14 }
  0x47   :  { %238 = vmatmul.mubr.bf16.vlgmr.msra.gmra.mrb[0].mxu0 %v65_v15 }
 0x11a   :  { %v164_v16 = vpop.f32.mrb[0].mxu0 }
 0x11b   :  { %v239_v18 = vpop.f32.mrb[1].mxu0  ;;  %v183_v21 = vadd.f32 %v211_v17, %v164_v16 }
 0x11c   :  { %v167_v19 = vpop.f32.mrb[2].mxu0 }
 0x11d   :  { %v240_v20 = vpop.f32.mrb[3].mxu0  ;;  %184 = vst [vmem:[#allocation7] sm:$0xff] %v183_v21 }
 0x11e   :  { %311 = shalt.err (!%p308_p6)
}
 0x11f   :  { %s312_s23 = scalar_lea.hbm %s416_s4, 128 }
 0x120   :  { %p313_p7 = scmp.ne.s32.totalorder %s416_s4, %s312_s23  ;;  %p316_p8 = scmp.lt.u32.totalorder %s312_s23, %s416_s4 }
 0x122   :  { %p318_p9 = pnand %p316_p8, %p313_p7 }
 0x124   :  { %321 = shalt.err (!%p318_p9)
}
 0x125   :  { %194 = dma.vmem_to_hbm [thread:$0]  %s192_s20, 128, %s416_s4, [#allocation4]  }
 0x126   :  { %326 = dma.done.wait [#allocation4], 128  }
 0x127   :  { %327 = vsyncadd [#allocation4], 4294967168 }
 0x128   :  { %198 = vsyncpa [#allocation3], 1 }
 0x129   :  { %199 = vsyncpa [#allocation6], 1 }
 0x12a   :  { %200 = vsyncpa [#allocation4], 1 }

</bundles_post_ra>
